<compile_context>
chip_gen: v5e
topology: v5e:2x2
jax: 0.10.0
libtpu: 0.0.40
codegen_flags: <defaults>
</compile_context>

<pallas_src>
import functools

import jax
import jax.numpy as jnp
from jax import lax
from jax.experimental import pallas as pl
from jax.experimental.pallas import tpu as pltpu


def _round_up(x: int, m: int) -> int:
    return ((x + m - 1) // m) * m


def _cdiv(a: int, b: int) -> int:
    return (a + b - 1) // b


def _vmem_budget_bytes() -> int:
    """Generation-aware scoped-VMEM budget used to pick tile sizes."""
    try:
        kind = jax.devices()[0].device_kind.lower()
    except Exception:
        kind = ""
    if "v5" in kind or "v6" in kind:
        return 96 << 20          # 128 MiB physical VMEM
    return 40 << 20              # v7x (64 MiB physical) and unknown chips


# ---------------------------------------------------------------------------
# Pallas kernels
# ---------------------------------------------------------------------------
def _conv3x3s2_kernel(r_ref, w01_ref, w2_ref, b_ref, o_ref):
    """One row tile of the stride-2 3x3 conv as 6 back-to-back MXU matmuls.

    r_ref  : (3, TM, 2*Cin) bf16 -- per-ky slabs; rows are (output_row,
             column_pair) flattened, lanes are (kx_sub in {0,1}, Cin).
    w01_ref: (3, 2*Cin, Cout_pad) bf16 -- taps (ky,0) and (ky,1) stacked on K.
    w2_ref : (3,   Cin, Cout_pad) bf16 -- taps (ky,2).
    b_ref  : (1, Cout_pad) f32.
    o_ref  : (TM, Cout_pad) bf16.
    """
    tm, cout = o_ref.shape
    cin = w2_ref.shape[1]

    acc = jnp.broadcast_to(b_ref[...], (tm, cout)).astype(jnp.float32)
    for ky in range(3):                       # static -> fully unrolled
        rk = r_ref[ky]                        # (TM, 2*Cin) bf16
        # taps (ky, kx=0) and (ky, kx=1): one K=2*Cin matmul
        acc = acc + jnp.dot(rk, w01_ref[ky],
                            preferred_element_type=jnp.float32)
        # tap (ky, kx=2) reads the *next* column pair's first pixel: shift the
        # flattened rows up by one.  The wrapped row only feeds the discarded
        # halo column, so correctness is unaffected.
        rk_next = jnp.concatenate([rk[1:], rk[:1]], axis=0)
        acc = acc + jnp.dot(rk_next[:, :cin], w2_ref[ky],
                            preferred_element_type=jnp.float32)
    o_ref[...] = acc.astype(o_ref.dtype)


def _avgpool2x2_kernel(x_ref, o_ref):
    """2x2 / stride-2 average pool on a row tile (pure VPU, f32 accumulation).

    x_ref: (tr, 2, Wo, 2, C) ; o_ref: (tr, Wo, C)
    """
    x = x_ref[...].astype(jnp.float32)
    s = x[:, 0, :, 0, :] + x[:, 0, :, 1, :] + x[:, 1, :, 0, :] + x[:, 1, :, 1, :]
    o_ref[...] = (s * 0.25).astype(o_ref.dtype)


# ---------------------------------------------------------------------------
# Wrappers (layout conversion + pallas_call)
# ---------------------------------------------------------------------------
@functools.partial(jax.jit, static_argnames=("padding",))
def downsample_conv(x_nchw, weight_oihw, bias, *, padding=1):
    """Conv2d(Cin, Cout, 3, stride=2, padding=padding) on NCHW input/output."""
    B, Cin, H, W = x_nchw.shape
    Cout = weight_oihw.shape[0]
    p = padding
    Ho = (H + 2 * p - 3) // 2 + 1
    Wo = (W + 2 * p - 3) // 2 + 1
    Wpair = Wo + 1                       # column pairs incl. the halo pair
    Hp, Wp = 2 * Ho + 2, 2 * Wo + 2      # padded extents (>= H+2p / W+2p)
    BH = B * Ho
    Cout_pad = _round_up(Cout, 128)      # lane-dense output stores

    # ---- operand staging (subsumes the NCHW->NHWC layout change) ----------
    x_bf = x_nchw.astype(jnp.bfloat16)
    xp = jnp.pad(x_bf, ((0, 0), (0, 0), (p, Hp - H - p), (p, Wp - W - p)))
    # 3 row-phase slabs (one per ky), each row split into column pairs.
    # ~0.75x of the f32 input bytes vs 2.25x for a full 9-tap im2col.
    rows = jnp.stack([xp[:, :, ky:ky + 2 * Ho:2, :] for ky in range(3)], axis=0)
    r = rows.reshape(3, B, Cin, Ho, Wpair, 2)
    r = jnp.transpose(r, (0, 1, 3, 4, 5, 2))          # (3,B,Ho,Wpair,2,Cin)
    r = r.reshape(3, BH, Wpair, 2 * Cin)

    # ---- tile sizing (budget-derived, generation-aware) --------------------
    budget = _vmem_budget_bytes()
    resident = 9 * Cin * Cout_pad * 2 + Cout_pad * 4      # single-buffered w + b
    per_row = Wpair * (24 * Cin + 20 * Cout_pad)          # streamed blocks + acc
    tr = max(8, (budget - resident) // max(per_row, 1))
    tr = min(tr, max(8, _round_up(_cdiv(BH, 2), 8)))      # >=2 tiles -> both v7x cores
    tr = _round_up(min(tr, max(BH, 8)), 8)
    if tr >= 16:
        tr = _round_up(tr, 16)                            # bf16 sublane packing
    BH_pad = _round_up(BH, tr)
    if BH_pad != BH:
        r = jnp.pad(r, ((0, 0), (0, BH_pad - BH), (0, 0), (0, 0)))
    TM = tr * Wpair
    M_pad = BH_pad * Wpair
    r = r.reshape(3, M_pad, 2 * Cin)

    # ---- weights / bias -----------------------------------------------------
    wt = jnp.transpose(weight_oihw, (2, 3, 1, 0))         # (3,3,Cin,Cout)
    wt = jnp.pad(wt, ((0, 0), (0, 0), (0, 0), (0, Cout_pad - Cout)))
    wt = wt.astype(jnp.bfloat16)
    w01 = wt[:, :2].reshape(3, 2 * Cin, Cout_pad)         # (kx,Cin) flattened on K
    w2 = wt[:, 2]                                         # (3, Cin, Cout_pad)
    b = jnp.pad(bias.astype(jnp.float32), (0, Cout_pad - Cout)).reshape(1, Cout_pad)

    vmem_need = (resident
                 + 2 * (3 * TM * 2 * Cin * 2)             # double-buffered r block
                 + 2 * (TM * Cout_pad * 2)                # double-buffered out block
                 + 3 * (TM * Cout_pad * 4)                # f32 acc temporaries
                 + (2 << 20))
    vmem_limit = int(min(max(vmem_need, 8 << 20), 100 << 20))

    cost = pl.CostEstimate(
        flops=2 * M_pad * 9 * Cin * Cout_pad,
        transcendentals=0,
        bytes_accessed=(r.size * r.dtype.itemsize
                        + w01.size * 2 + w2.size * 2 + b.size * 4
                        + M_pad * Cout_pad * 2),
    )

    out = pl.pallas_call(
        _conv3x3s2_kernel,
        out_shape=jax.ShapeDtypeStruct((M_pad, Cout_pad), jnp.bfloat16),
        grid=(M_pad // TM,),
        in_specs=[
            # streamed: one row tile of the 3 ky slabs
            pl.BlockSpec((3, TM, 2 * Cin), lambda i: (0, i, 0)),
            # resident, single-buffered weights / bias
            pl.BlockSpec(memory_space=pltpu.MemorySpace.VMEM),
            pl.BlockSpec(memory_space=pltpu.MemorySpace.VMEM),
            pl.BlockSpec(memory_space=pltpu.MemorySpace.VMEM),
        ],
        out_specs=pl.BlockSpec((TM, Cout_pad), lambda i: (i, 0)),
        compiler_params=pltpu.CompilerParams(
            dimension_semantics=("parallel",),
            vmem_limit_bytes=vmem_limit),
        cost_estimate=cost,
    )(r, w01, w2, b)

    out = out.reshape(BH_pad, Wpair, Cout_pad)[:BH, :Wo, :Cout]
    out = out.reshape(B, Ho, Wo, Cout)
    # TODO(synk): keep activations NHWC across the surrounding model (or tile
    # Cout for >1280-channel layers); this exit transpose is pure layout glue.
    return jnp.transpose(out, (0, 3, 1, 2)).astype(x_nchw.dtype)


@jax.jit
def downsample_avgpool(x_nchw):
    """AvgPool2d(kernel_size=2, stride=2) on NCHW input, NCHW output."""
    B, C, H, W = x_nchw.shape
    Ho, Wo = H // 2, W // 2                      # PyTorch floors odd H/W
    x_nhwc = jnp.transpose(x_nchw, (0, 2, 3, 1))[:, :2 * Ho, :2 * Wo, :]
    R = B * Ho
    xr = x_nhwc.reshape(R, 2, Wo, 2, C)          # free contiguous regrouping

    isz = x_nchw.dtype.itemsize
    per_row = Wo * C * (10 * isz + 8)            # dbl-buffered in/out + f32 temps
    budget = min(_vmem_budget_bytes() // 8, 8 << 20)
    tr = max(8, budget // max(per_row, 1))
    tr = min(tr, max(8, _round_up(_cdiv(R, 2), 8)))   # >=2 tiles for megacore
    tr = _round_up(min(tr, max(R, 8)), 8)
    R_pad = _round_up(R, tr)
    if R_pad != R:
        xr = jnp.pad(xr, ((0, R_pad - R), (0, 0), (0, 0), (0, 0)))

    cost = pl.CostEstimate(
        flops=4 * R_pad * Wo * C,
        transcendentals=0,
        bytes_accessed=xr.size * isz + R_pad * Wo * C * isz,
    )

    out = pl.pallas_call(
        _avgpool2x2_kernel,
        out_shape=jax.ShapeDtypeStruct((R_pad, Wo, C), x_nchw.dtype),
        grid=(R_pad // tr,),
        in_specs=[pl.BlockSpec((tr, 2, Wo, 2, C), lambda i: (i, 0, 0, 0, 0))],
        out_specs=pl.BlockSpec((tr, Wo, C), lambda i: (i, 0, 0)),
        compiler_params=pltpu.CompilerParams(
            dimension_semantics=("parallel",),
            vmem_limit_bytes=int(min(2 * per_row * tr + (8 << 20), 100 << 20))),
        cost_estimate=cost,
    )(xr)

    out = out[:R].reshape(B, Ho, Wo, C)
    # TODO(synk): keep activations NHWC model-wide; these transposes dominate
    # the avgpool's end-to-end cost.
    return jnp.transpose(out, (0, 3, 1, 2))


# ---------------------------------------------------------------------------
# Main
# ---------------------------------------------------------------------------
if __name__ == "__main__":
    key = jax.random.PRNGKey(0)
    k_x, k_w, k_b = jax.random.split(key, 3)

    B, C, H, W = 2, 4, 16, 16
    Cout = 8  # exercise out_channels != channels on the conv path

    x = jax.random.normal(k_x, (B, C, H, W), dtype=jnp.float32)
    weight = 0.1 * jax.random.normal(k_w, (Cout, C, 3, 3), dtype=jnp.float32)
    bias = 0.1 * jax.random.normal(k_b, (Cout,), dtype=jnp.float32)

    # ---- use_conv=True path ----
    y_conv = downsample_conv(x, weight, bias)
    jax.block_until_ready(y_conv)
    assert y_conv.shape == (B, Cout, H // 2, W // 2)

    # reference on the same bf16-rounded operands the kernel consumes
    x_bf = x.astype(jnp.bfloat16).astype(jnp.float32)
    w_bf = weight.astype(jnp.bfloat16).astype(jnp.float32)
    y_ref_bf = lax.conv_general_dilated(
        x_bf, w_bf, window_strides=(2, 2), padding=((1, 1), (1, 1)),
        dimension_numbers=("NCHW", "OIHW", "NCHW"),
    ) + bias.reshape(1, Cout, 1, 1)
    # kernel stores bf16 (f32 accumulate) -> tolerance covers one bf16 rounding
    assert jnp.allclose(y_conv, y_ref_bf, atol=2e-2, rtol=2e-2)

    # sanity check against the full-f32 conv
    y_ref_f32 = lax.conv_general_dilated(
        x, weight, window_strides=(2, 2), padding=((1, 1), (1, 1)),
        dimension_numbers=("NCHW", "OIHW", "NCHW"),
    ) + bias.reshape(1, Cout, 1, 1)
    assert jnp.allclose(y_conv, y_ref_f32, atol=5e-2, rtol=5e-2)

    # ---- use_conv=False path (AvgPool2d(2, 2); requires Cin == Cout) ----
    y_pool = downsample_avgpool(x)
    jax.block_until_ready(y_pool)
    assert y_pool.shape == (B, C, H // 2, W // 2)
    y_pool_ref = x.reshape(B, C, H // 2, 2, W // 2, 2).mean(axis=(3, 5))
    assert jnp.allclose(y_pool, y_pool_ref, atol=1e-5, rtol=1e-5)

    print("KERNEL_OK")
</pallas_src>

<mosaic_0001>
module attributes {stable_mosaic.version = 11 : i64} {
  func.func @_conv3x3s2_kernel(%arg0: i32, %arg1: memref<3x72x8xbf16, #tpu.memory_space<vmem>>, %arg2: memref<3x8x128xbf16, #tpu.memory_space<vmem>>, %arg3: memref<3x4x128xbf16, #tpu.memory_space<vmem>>, %arg4: memref<1x128xf32, #tpu.memory_space<vmem>>, %arg5: memref<72x128xbf16, #tpu.memory_space<vmem>>) attributes {dimension_semantics = [#tpu.dimension_semantics<parallel>], iteration_bounds = array<i64: 2>, scalar_prefetch = 0 : i64, scratch_operands = 0 : i64, tpu.core_type = #tpu.core_type<tc>, window_params = [{transform_indices = @transform_0, window_bounds = array<i64: 3, 72, 8>}, {pipeline_mode = #tpu.pipeline_mode<synchronous>, transform_indices = @transform_1, window_bounds = array<i64: 3, 8, 128>}, {pipeline_mode = #tpu.pipeline_mode<synchronous>, transform_indices = @transform_2, window_bounds = array<i64: 3, 4, 128>}, {pipeline_mode = #tpu.pipeline_mode<synchronous>, transform_indices = @transform_3, window_bounds = array<i64: 1, 128>}, {transform_indices = @transform_4, window_bounds = array<i64: 72, 128>}]} {
    %c0 = arith.constant 0 : index
    %c0_0 = arith.constant 0 : index
    %0 = vector.load %arg4[%c0, %c0_0] : memref<1x128xf32, #tpu.memory_space<vmem>>, vector<1x128xf32>
    %1 = vector.shape_cast %0 : vector<1x128xf32> to vector<1x128xf32>
    %2 = vector.broadcast %1 : vector<1x128xf32> to vector<72x128xf32>
    %c0_1 = arith.constant 0 : index
    %c0_2 = arith.constant 0 : index
    %c0_3 = arith.constant 0 : index
    %3 = vector.load %arg1[%c0_1, %c0_2, %c0_3] : memref<3x72x8xbf16, #tpu.memory_space<vmem>>, vector<1x72x8xbf16>
    %4 = vector.shape_cast %3 : vector<1x72x8xbf16> to vector<72x8xbf16>
    %c0_4 = arith.constant 0 : index
    %c0_5 = arith.constant 0 : index
    %c0_6 = arith.constant 0 : index
    %5 = vector.load %arg2[%c0_4, %c0_5, %c0_6] : memref<3x8x128xbf16, #tpu.memory_space<vmem>>, vector<1x8x128xbf16>
    %6 = vector.shape_cast %5 : vector<1x8x128xbf16> to vector<8x128xbf16>
    %cst = arith.constant dense<0.000000e+00> : vector<72x128xf32>
    %7 = tpu.matmul %4, %6, %cst {dimension_numbers = #tpu.dot_dimension_numbers<[1], [0], [0], [1], [0, 0, 1, 1], [], []>} : vector<72x8xbf16>, vector<8x128xbf16>, vector<72x128xf32> -> vector<72x128xf32>
    %8 = arith.addf %2, %7 : vector<72x128xf32>
    %9 = vector.extract_strided_slice %4 {offsets = [1, 0], sizes = [71, 8], strides = [1, 1]} : vector<72x8xbf16> to vector<71x8xbf16>
    %10 = vector.extract_strided_slice %4 {offsets = [0, 0], sizes = [1, 8], strides = [1, 1]} : vector<72x8xbf16> to vector<1x8xbf16>
    %11 = tpu.concatenate %9, %10 in 0 : vector<71x8xbf16>, vector<1x8xbf16> -> vector<72x8xbf16>
    %12 = vector.extract_strided_slice %11 {offsets = [0, 0], sizes = [72, 4], strides = [1, 1]} : vector<72x8xbf16> to vector<72x4xbf16>
    %c0_7 = arith.constant 0 : index
    %c0_8 = arith.constant 0 : index
    %c0_9 = arith.constant 0 : index
    %13 = vector.load %arg3[%c0_7, %c0_8, %c0_9] : memref<3x4x128xbf16, #tpu.memory_space<vmem>>, vector<1x4x128xbf16>
    %14 = vector.shape_cast %13 : vector<1x4x128xbf16> to vector<4x128xbf16>
    %cst_10 = arith.constant dense<0.000000e+00> : vector<72x128xf32>
    %15 = tpu.matmul %12, %14, %cst_10 {dimension_numbers = #tpu.dot_dimension_numbers<[1], [0], [0], [1], [0, 0, 1, 1], [], []>} : vector<72x4xbf16>, vector<4x128xbf16>, vector<72x128xf32> -> vector<72x128xf32>
    %16 = arith.addf %8, %15 : vector<72x128xf32>
    %c1 = arith.constant 1 : index
    %c0_11 = arith.constant 0 : index
    %c0_12 = arith.constant 0 : index
    %17 = vector.load %arg1[%c1, %c0_11, %c0_12] : memref<3x72x8xbf16, #tpu.memory_space<vmem>>, vector<1x72x8xbf16>
    %18 = vector.shape_cast %17 : vector<1x72x8xbf16> to vector<72x8xbf16>
    %c1_13 = arith.constant 1 : index
    %c0_14 = arith.constant 0 : index
    %c0_15 = arith.constant 0 : index
    %19 = vector.load %arg2[%c1_13, %c0_14, %c0_15] : memref<3x8x128xbf16, #tpu.memory_space<vmem>>, vector<1x8x128xbf16>
    %20 = vector.shape_cast %19 : vector<1x8x128xbf16> to vector<8x128xbf16>
    %cst_16 = arith.constant dense<0.000000e+00> : vector<72x128xf32>
    %21 = tpu.matmul %18, %20, %cst_16 {dimension_numbers = #tpu.dot_dimension_numbers<[1], [0], [0], [1], [0, 0, 1, 1], [], []>} : vector<72x8xbf16>, vector<8x128xbf16>, vector<72x128xf32> -> vector<72x128xf32>
    %22 = arith.addf %16, %21 : vector<72x128xf32>
    %23 = vector.extract_strided_slice %18 {offsets = [1, 0], sizes = [71, 8], strides = [1, 1]} : vector<72x8xbf16> to vector<71x8xbf16>
    %24 = vector.extract_strided_slice %18 {offsets = [0, 0], sizes = [1, 8], strides = [1, 1]} : vector<72x8xbf16> to vector<1x8xbf16>
    %25 = tpu.concatenate %23, %24 in 0 : vector<71x8xbf16>, vector<1x8xbf16> -> vector<72x8xbf16>
    %26 = vector.extract_strided_slice %25 {offsets = [0, 0], sizes = [72, 4], strides = [1, 1]} : vector<72x8xbf16> to vector<72x4xbf16>
    %c1_17 = arith.constant 1 : index
    %c0_18 = arith.constant 0 : index
    %c0_19 = arith.constant 0 : index
    %27 = vector.load %arg3[%c1_17, %c0_18, %c0_19] : memref<3x4x128xbf16, #tpu.memory_space<vmem>>, vector<1x4x128xbf16>
    %28 = vector.shape_cast %27 : vector<1x4x128xbf16> to vector<4x128xbf16>
    %cst_20 = arith.constant dense<0.000000e+00> : vector<72x128xf32>
    %29 = tpu.matmul %26, %28, %cst_20 {dimension_numbers = #tpu.dot_dimension_numbers<[1], [0], [0], [1], [0, 0, 1, 1], [], []>} : vector<72x4xbf16>, vector<4x128xbf16>, vector<72x128xf32> -> vector<72x128xf32>
    %30 = arith.addf %22, %29 : vector<72x128xf32>
    %c2 = arith.constant 2 : index
    %c0_21 = arith.constant 0 : index
    %c0_22 = arith.constant 0 : index
    %31 = vector.load %arg1[%c2, %c0_21, %c0_22] : memref<3x72x8xbf16, #tpu.memory_space<vmem>>, vector<1x72x8xbf16>
    %32 = vector.shape_cast %31 : vector<1x72x8xbf16> to vector<72x8xbf16>
    %c2_23 = arith.constant 2 : index
    %c0_24 = arith.constant 0 : index
    %c0_25 = arith.constant 0 : index
    %33 = vector.load %arg2[%c2_23, %c0_24, %c0_25] : memref<3x8x128xbf16, #tpu.memory_space<vmem>>, vector<1x8x128xbf16>
    %34 = vector.shape_cast %33 : vector<1x8x128xbf16> to vector<8x128xbf16>
    %cst_26 = arith.constant dense<0.000000e+00> : vector<72x128xf32>
    %35 = tpu.matmul %32, %34, %cst_26 {dimension_numbers = #tpu.dot_dimension_numbers<[1], [0], [0], [1], [0, 0, 1, 1], [], []>} : vector<72x8xbf16>, vector<8x128xbf16>, vector<72x128xf32> -> vector<72x128xf32>
    %36 = arith.addf %30, %35 : vector<72x128xf32>
    %37 = vector.extract_strided_slice %32 {offsets = [1, 0], sizes = [71, 8], strides = [1, 1]} : vector<72x8xbf16> to vector<71x8xbf16>
    %38 = vector.extract_strided_slice %32 {offsets = [0, 0], sizes = [1, 8], strides = [1, 1]} : vector<72x8xbf16> to vector<1x8xbf16>
    %39 = tpu.concatenate %37, %38 in 0 : vector<71x8xbf16>, vector<1x8xbf16> -> vector<72x8xbf16>
    %40 = vector.extract_strided_slice %39 {offsets = [0, 0], sizes = [72, 4], strides = [1, 1]} : vector<72x8xbf16> to vector<72x4xbf16>
    %c2_27 = arith.constant 2 : index
    %c0_28 = arith.constant 0 : index
    %c0_29 = arith.constant 0 : index
    %41 = vector.load %arg3[%c2_27, %c0_28, %c0_29] : memref<3x4x128xbf16, #tpu.memory_space<vmem>>, vector<1x4x128xbf16>
    %42 = vector.shape_cast %41 : vector<1x4x128xbf16> to vector<4x128xbf16>
    %cst_30 = arith.constant dense<0.000000e+00> : vector<72x128xf32>
    %43 = tpu.matmul %40, %42, %cst_30 {dimension_numbers = #tpu.dot_dimension_numbers<[1], [0], [0], [1], [0, 0, 1, 1], [], []>} : vector<72x4xbf16>, vector<4x128xbf16>, vector<72x128xf32> -> vector<72x128xf32>
    %44 = arith.addf %36, %43 : vector<72x128xf32>
    %45 = arith.truncf %44 : vector<72x128xf32> to vector<72x128xbf16>
    %c0_31 = arith.constant 0 : index
    %c0_32 = arith.constant 0 : index
    %46 = vector.load %arg5[%c0_31, %c0_32] : memref<72x128xbf16, #tpu.memory_space<vmem>>, vector<72x128xbf16>
    tpu.vector_store %arg5[%c0_31, %c0_32], %45 {strides = array<i32>} : memref<72x128xbf16, #tpu.memory_space<vmem>>, vector<72x128xbf16>,
    return
  }
  func.func @transform_0(%arg0: i32) -> (i32, i32, i32) {
    %c0_i32 = arith.constant 0 : i32
    %c0_i32_0 = arith.constant 0 : i32
    %c0_i32_1 = arith.constant 0 : i32
    return %c0_i32, %arg0, %c0_i32_0 : i32, i32, i32
  }
  func.func @transform_1(%arg0: i32) -> (i32, i32, i32) {
    %c0_i32 = arith.constant 0 : i32
    %c0_i32_0 = arith.constant 0 : i32
    %c0_i32_1 = arith.constant 0 : i32
    %c0_i32_2 = arith.constant 0 : i32
    return %c0_i32, %c0_i32_0, %c0_i32_1 : i32, i32, i32
  }
  func.func @transform_2(%arg0: i32) -> (i32, i32, i32) {
    %c0_i32 = arith.constant 0 : i32
    %c0_i32_0 = arith.constant 0 : i32
    %c0_i32_1 = arith.constant 0 : i32
    %c0_i32_2 = arith.constant 0 : i32
    return %c0_i32, %c0_i32_0, %c0_i32_1 : i32, i32, i32
  }
  func.func @transform_3(%arg0: i32) -> (i32, i32) {
    %c0_i32 = arith.constant 0 : i32
    %c0_i32_0 = arith.constant 0 : i32
    %c0_i32_1 = arith.constant 0 : i32
    return %c0_i32, %c0_i32_0 : i32, i32
  }
  func.func @transform_4(%arg0: i32) -> (i32, i32) {
    %c0_i32 = arith.constant 0 : i32
    %c0_i32_0 = arith.constant 0 : i32
    return %arg0, %c0_i32 : i32, i32
  }
}

</mosaic_0001>

<bundles_post_ra>
// kernel: downsample_conv.1
= control target key start
LH: loop header
LB: loop body
LE: loop exit
PB: predicated region body
PF: predicated region fallthrough
CT: control target
= control target key end

     0   :  { %s1252_s15 = smov 0   ;;  %s1254_s16 = smov 0   ;;  %s1434_s0 = inlined_call_operand.vmem [shape: bf16[3,144,8], index: 0, kind: input, shape index: {}]   ;;  %s1435_s1 = inlined_call_operand.vmem [shape: bf16[3,8,128], index: 1, kind: input, shape index: {}]   ;;  %s1436_s2 = inlined_call_operand.vmem [shape: bf16[3,4,128], index: 2, kind: input, shape index: {}]   ;;  %s1437_s3 = inlined_call_operand.vmem [shape: f32[1,128], index: 3, kind: input, shape index: {}]   ;;  %s1438_s4 = inlined_call_operand.vmem [shape: bf16[144,128], index: 4, kind: output, shape index: {}]  }
   0x1   :  { %s1256_s17 = smov 0  }
   0x2 LB: > { %s1035_s18 = sadd.s32 4294967295, %s1225_s17   ;;  %s1269_s19 = sadd.s32 1, %s1225_s17   ;;  %s1225_s17 = sphi %s1256_s17, %s1443_s17   ;;  %s1221_s16 = sphi %s1254_s16, %s1442_s16   ;;  %s1217_s15 = sphi %s1252_s15, %s1441_s15  }
   0x3   : > { %s18_s20 = ssub.s32 %s1225_s17, %s1269_s19  ;;  %s21_s21 = sadd.s32 1, %s1221_s16 }
   0x4   : > { %p19_p0 = scmp.eq.s32.totalorder %s18_s20, 0  ;;  %p28_p1 = scmp.ne.s32.totalorder %s1221_s16, %s1217_s15 }
   0x5   : > { %p29_p2 = scmp.eq.s32.totalorder %s1225_s17, 0  ;;  %p1038_p4 = scmp.ge.s32.totalorder %s1225_s17, 2 }
   0x6   : > { %s1278_s22 = scalar_select %p19_p0, %s1221_s16, %s21_s21  }
   0x7   : > { %p30_p3 = por %p29_p2, %p28_p1  ;;  %152 = sbr.rel (%p1038_p4) target bundleno = 32 (0x20), region = 28 }
   0xc   : > { %155 = sbr.rel (!%p30_p3) target bundleno = 32 (0x20), region = 32  ;;  %s157_s23 = sand.u32 (%p30_p3), 1, %s1221_s16  }
   0xd   : > { %s1132_s24 = smul.u32 (%p30_p3), 36, %s1225_s17 }
   0xe   : > { %s1176_s25 = smul.u32 (%p30_p3), 108, %s157_s23 }
   0xf   : > { %s162_s28 = scalar_lea.vmem (%p30_p3), %s1434_s0, %s1132_s24 }
  0x10   : > { %v179_v0 = vld [vmem:[%s162_s28] sm:$0xff] (%p30_p3)   ;;  %v183_v1 = vld [vmem:[%s162_s28 + $0x8] sm:$0xff] (%p30_p3)   ;;  %v187_v2 = vld [vmem:[%s162_s28 + $0x10] sm:$0xff] (%p30_p3)   ;;  %s159_s29 = scalar_lea.vmem (%p30_p3), [#allocation2], %s1176_s25 }
  0x11   : > { %180 = vst [vmem:[%s159_s29] sm:$0xff] %v179_v0   ;;  %v191_v3 = vld [vmem:[%s162_s28 + $0x18] sm:$0xff]   ;;  %v195_v4 = vld [vmem:[%s162_s28 + $0x20] sm:$0xf]  ;;  %v197_v5 = vld [vmem:[%s162_s28 + $0x48] sm:$0xff]  }
  0x12   : > { %184 = vst [vmem:[%s159_s29 + $0x8] sm:$0xff] %v183_v1   ;;  %v201_v6 = vld [vmem:[%s162_s28 + $0x50] sm:$0xff]   ;;  %v205_v7 = vld [vmem:[%s162_s28 + $0x58] sm:$0xff]   ;;  %v209_v8 = vld [vmem:[%s162_s28 + $0x60] sm:$0xff]  }
  0x13   : > { %188 = vst [vmem:[%s159_s29 + $0x10] sm:$0xff] %v187_v2   ;;  %v213_v9 = vld [vmem:[%s162_s28 + $0x68] sm:$0xf]  ;;  %v215_v10 = vld [vmem:[%s162_s28 + $0x90] sm:$0xff]   ;;  %v219_v11 = vld [vmem:[%s162_s28 + $0x98] sm:$0xff]  }
  0x14   : > { %192 = vst [vmem:[%s159_s29 + $0x18] sm:$0xff] %v191_v3   ;;  %v223_v12 = vld [vmem:[%s162_s28 + $0xa0] sm:$0xff]   ;;  %v227_v13 = vld [vmem:[%s162_s28 + $0xa8] sm:$0xff]   ;;  %v231_v14 = vld [vmem:[%s162_s28 + $0xb0] sm:$0xf] }
  0x15   : > { %196 = vst [vmem:[%s159_s29 + $0x20] sm:$0xf] %v195_v4 }
  0x16   : > { %198 = vst [vmem:[%s159_s29 + $0x24] sm:$0xff] %v197_v5  }
  0x17   : > { %202 = vst [vmem:[%s159_s29 + $0x2c] sm:$0xff] %v201_v6  }
  0x18   : > { %206 = vst [vmem:[%s159_s29 + $0x34] sm:$0xff] %v205_v7  }
  0x19   : > { %210 = vst [vmem:[%s159_s29 + $0x3c] sm:$0xff] %v209_v8  }
  0x1a   : > { %214 = vst [vmem:[%s159_s29 + $0x44] sm:$0xf] %v213_v9 }
  0x1b   : > { %216 = vst [vmem:[%s159_s29 + $0x48] sm:$0xff] %v215_v10  }
  0x1c   : > { %220 = vst [vmem:[%s159_s29 + $0x50] sm:$0xff] %v219_v11  }
  0x1d   : > { %224 = vst [vmem:[%s159_s29 + $0x58] sm:$0xff] %v223_v12  }
  0x1e   : > { %228 = vst [vmem:[%s159_s29 + $0x60] sm:$0xff] %v227_v13  }
  0x1f   : > { %232 = vst [vmem:[%s159_s29 + $0x68] sm:$0xf] %v231_v14 }
  0x20 PF: > { %p1040_p5 = scmp.ge.s32.totalorder %s1225_s17, 1  ;;  %p309_p6 = scmp.lt.s32.totalorder %s1225_s17, 3 }
  0x22   : > { %p310_p7 = pnand %p1040_p5, %p309_p6 }
  0x23   : > { %s316_s6 = sand.u32 (!%p310_p7), 1, %s1217_s15   ;;  %s342_s26 = smul.u32 (!%p310_p7), 9, %s1035_s18 }
  0x24   : > { %313 = sbr.rel (%p310_p7) target bundleno = 299 (0x12b), region = 73 }
  0x25   : > { %s1177_s7 = smul.u32 (!%p310_p7), 108, %s316_s6  ;;  %p343_p8 = scmp.lt.s32.totalorder (!%p310_p7), %s342_s26, 17 }
  0x27   : > { %s1308_s20 = scalar_lea.vmem (!%p310_p7), [#allocation2], %s1177_s7 }
  0x29   : > { %v362_v15 = vld [vmem:[%s1435_s1] sm:$0xf]  ;;  %vm402_vm0 = vcmask 1043456   ;;  %vm511_vm1 = vcmask 1041408   ;;  %vm386_vm2 = vcmask 64512   ;;  %v1135_v25 = vld [vmem:[%s1308_s20 + $0x18] sm:$0xff] }
  0x2a   : > { %v404_v16 = vsel %vm402_vm0, %v362_v15, 0  ;;  %v494_v17 = vld [vmem:[%s1436_s2] sm:$0x3]  ;;  %v1106_v19 = vld [vmem:[%s1435_s1 + $0x8] sm:$0xf]  ;;  %v469_v32 = vshll.u32 %v1135_v25, 16 }
  0x2b   : > { %413 = vmatpush.bf16.msra.mxu0 %v404_v16  ;;  %1174 = vmatpush.bf16.msra.mxu2 %v404_v16  ;;  %v513_v18 = vsel %vm511_vm1, %v494_v17, 0  ;;  %v1124_v20 = vld [vmem:[%s1436_s2 + $0x4] sm:$0x3]  ;;  %v807_v21 = vsel %vm402_vm0, %v1106_v19, 0  ;;  %v1133_v26 = vld [vmem:[%s1308_s20 + $0x8] sm:$0xff]  ;;  %v473_v35 = vshrl.u32 %v1135_v25, 16 }
  0x2c   : > { %522 = vmatpush.bf16.msra.mxu1 %v513_v18  ;;  %1175 = vmatpush.bf16.msra.mxu3 %v513_v18  ;;  %v911_v22 = vsel %vm511_vm1, %v1124_v20, 0  ;;  %v1073_v23 = vld [vmem:[%s1435_s1 + $0x4] sm:$0xf]  ;;  %v1091_v31 = vld [vmem:[%s1436_s2 + $0x2] sm:$0x3]  ;;  %v455_v33 = vshll.u32 %v1133_v26, 16 }
  0x2d   : > { %v1143_v24 = vld [vmem:[%s1308_s20] sm:$0xff]   ;;  %v608_v27 = vsel %vm402_vm0, %v1073_v23, 0  ;;  %v712_v37 = vsel %vm511_vm1, %v1091_v31, 0  ;;  %vm448_vm3 = vsmask.f32 7424  ;;  %v471_v40 = vrot.slane %v469_v32, 1 }
  0x2e   : > { %1054 = vmatmul.msk.bf16.vlgmr.msra.gmra.mxu0 %vm386_vm2, %v1143_v24  ;;  %v449_v28 = vshrl.u32 %v1143_v24, 16  ;;  %v451_v29 = vshll.u32 %v1143_v24, 16  ;;  %v361_v30 = vld [vmem:[%s1308_s20 + $0x20] sm:$0xff]   ;;  %1057 = vmatmul.msk.bf16.vlgmr.msra.gmra.mxu2 %vm386_vm2, %v1135_v25  ;;  %v457_v38 = vrot.slane %v455_v33, 1  ;;  %vm495_vm4 = vcmask 31744   ;;  %v1134_v47 = vld [vmem:[%s1308_s20 + $0x10] sm:$0xff] }
  0x2f   : > { %816 = vmatpush.bf16.msrb.mxu0 %v807_v21  ;;  %617 = vmatpush.bf16.msrb.mxu2 %v608_v27  ;;  %v380_v34 = vunpack.c.l.b16 %v361_v30  ;;  %v475_v42 = vor.u32 %v473_v35, %v471_v40  ;;  %v1144_v45 = vunpack.c.l.b16 %v1143_v24  ;;  %v459_v50 = vshrl.u32 %v1133_v26, 16  ;;  %v1065_v56 = vld [vmem:[%s1308_s20 + $0x28] sm:$0xf]  ;;  %v1136_v1 = vld [vmem:[%s1308_s20 + $0x2c] sm:$0xff]  ;;  %v1137_v15 = vld [vmem:[%s1308_s20 + $0x34] sm:$0xff]  ;;  %s1445_s26 = smov (!%p343_p8, %s342_s26), 17 }
  0x30   : > { %920 = vmatpush.bf16.msrb.mxu1 %v911_v22  ;;  %v453_v36 = vrot.slane %v451_v29, 1  ;;  %721 = vmatpush.bf16.msrb.mxu3 %v712_v37  ;;  %v462_v51 = vshll.u32 %v1134_v47, 16  ;;  %vm491_vm5 = vsmask.f32 3328  ;;  %v578_v59 = vunpack.c.h.b16 %v361_v30  ;;  %v1344_v11 = vld [vmem:[%s1308_s20 + $0x48] sm:$0xff]   ;;  %v1139_v14 = vld [vmem:[%s1308_s20 + $0x50] sm:$0xff] }
  0x31   : > { %v385_v39 = vpack.c.b16 %v380_v34, %v380_v34  ;;  %v484_v49 = vpack.c.b16 %v1144_v45, %v1144_v45  ;;  %v461_v54 = vor.u32 %v459_v50, %v457_v38  ;;  %v579_v60 = vunpack.c.l.b16 %v1065_v56  ;;  %vm1331_vm6 = vmand %vm402_vm0, %vm491_vm5  ;;  %v1138_v30 = vld [vmem:[%s1308_s20 + $0x3c] sm:$0xff]  ;;  %v1105_v56 = vld [vmem:[%s1308_s20 + $0x68] sm:$0xf]  ;;  %s1041_s27 = sshll.u32 %s1445_s26, 2 }
  0x32   : > { %v454_v41 = vor.u32 %v453_v36, %v449_v28  ;;  %v464_v55 = vrot.slane %v462_v51, 1  ;;  %v466_v3 = vshrl.u32 %v1134_v47, 16  ;;  %v658_v6 = vshll.u32 %v1136_v1, 16  ;;  %v1140_v28 = vld [vmem:[%s1308_s20 + $0x58] sm:$0xff]  ;;  %s1410_s28 = scalar_lea.vmem %s1438_s4, %s1041_s27 }
  0x33   : > { %v476_v43 = vshll.u32 %v385_v39, 16  ;;  %v480_v52 = vshrl.u32 %v385_v39, 16  ;;  %v486_v53 = vshll.u32 %v484_v49, 16  ;;  %v587_v0 = vpack.c.b16 %v579_v60, %v578_v59  ;;  %v1141_v49 = vld [vmem:[%s1308_s20 + $0x60] sm:$0xff] }
  0x34   : > { %v458_v44 = vsel %vm448_vm3, %v454_v41, %v457_v38  ;;  %v465_v61 = vsel %vm448_vm3, %v461_v54, %v464_v55  ;;  %v468_v7 = vor.u32 %v466_v3, %v464_v55  ;;  %v660_v9 = vrot.slane %v658_v6, 1 }
  0x35   : > { %1059 = vmatmul.msk.bf16.vlgmr.msra.gmra.mxu1 %vm495_vm4, %v458_v44  ;;  %v478_v46 = vrot.slane %v476_v43, 1  ;;  %v488_v58 = vrot.slane %v486_v53, 5  ;;  %v654_v2 = vshll.u32 %v587_v0, 16  ;;  %v652_v4 = vshrl.u32 %v587_v0, 16 }
  0x36   : > { %v472_v10 = vsel %vm448_vm3, %v468_v7, %v471_v40  ;;  %v853_v13 = vshll.u32 %v1344_v11, 16  ;;  %v851_v16 = vshrl.u32 %v1344_v11, 16  ;;  %v857_v18 = vshll.u32 %v1139_v14, 16 }
  0x37   : > { %v479_v48 = vsel %vm448_vm3, %v475_v42, %v478_v46  ;;  %v482_v57 = vor.u32 %v480_v52, %v478_v46  ;;  %v656_v5 = vrot.slane %v654_v2, 1  ;;  %v662_v19 = vshrl.u32 %v1136_v1, 16 }
  0x38   : > { %1062 = vmatmul.msk.bf16.vlgmr.msra.gmra.mxu3 %vm495_vm4, %v479_v48  ;;  %v855_v17 = vrot.slane %v853_v13, 1  ;;  %v665_v20 = vshll.u32 %v1137_v15, 16  ;;  %v859_v22 = vrot.slane %v857_v18, 1  ;;  %v861_v31 = vshrl.u32 %v1139_v14, 16 }
  0x39   : > { %v493_v63 = vsel %vm1331_vm6, %v482_v57, %v488_v58  ;;  %v657_v8 = vor.u32 %v656_v5, %v652_v4  ;;  %v664_v23 = vor.u32 %v662_v19, %v660_v9  ;;  %v864_v32 = vshll.u32 %v1140_v28, 16 }
  0x3a   : > { %v856_v21 = vor.u32 %v855_v17, %v851_v16  ;;  %v667_v24 = vrot.slane %v665_v20, 1  ;;  %v669_v34 = vshrl.u32 %v1137_v15, 16  ;;  %v672_v35 = vshll.u32 %v1138_v30, 16 }
  0x3b   : > { %v661_v12 = vsel %vm448_vm3, %v657_v8, %v660_v9  ;;  %v863_v36 = vor.u32 %v861_v31, %v859_v22  ;;  %v866_v37 = vrot.slane %v864_v32, 1  ;;  %v687_v41 = vpack.c.b16 %v578_v59, %v578_v59 }
  0x3c   : > { %v860_v25 = vsel %vm448_vm3, %v856_v21, %v859_v22  ;;  %v668_v27 = vsel %vm448_vm3, %v664_v23, %v667_v24  ;;  %v674_v40 = vrot.slane %v672_v35, 1  ;;  %v868_v51 = vshrl.u32 %v1140_v28, 16 }
  0x3d   : > { %v867_v42 = vsel %vm448_vm3, %v863_v36, %v866_v37  ;;  %v689_v45 = vshll.u32 %v687_v41, 16  ;;  %v871_v52 = vshll.u32 %v1141_v49, 16  ;;  %v676_v53 = vshrl.u32 %v1138_v30, 16 }
  0x3e   : > { %1055 = vmatmul.msk.bf16.gmra.mxu0 %vm386_vm2, %v1133_v26  ;;  %1058 = vmatmul.msk.bf16.gmra.mxu2 %vm386_vm2, %v385_v39  ;;  %v1072_v26 = vld [vmem:[%s1308_s20 + $0x44] sm:$0xf]  ;;  %v671_v39 = vor.u32 %v669_v34, %v667_v24  ;;  %v870_v54 = vor.u32 %v868_v51, %v866_v37  ;;  %v785_v59 = vunpack.c.l.b16 %v1105_v56  ;;  %v1148_v3 = vunpack.c.l.b16 %v1344_v11 }
  0x3f   : > { %v586_v29 = vunpack.c.l.b16 %v1072_v26  ;;  %v691_v48 = vrot.slane %v689_v45, 5  ;;  %v873_v55 = vrot.slane %v871_v52, 1  ;;  %v678_v57 = vor.u32 %v676_v53, %v674_v40 }
  0x40   : > { %v675_v46 = vsel %vm448_vm3, %v671_v39, %v674_v40  ;;  %v886_v5 = vpack.c.b16 %v1148_v3, %v1148_v3 }
  0x41   : > { %v591_v33 = vpack.c.b16 %v586_v29, %v586_v29  ;;  %v874_v58 = vsel %vm448_vm3, %v870_v54, %v873_v55 }
  0x42   : > { %v888_v7 = vshll.u32 %v886_v5, 16 }
  0x43   : > { %v679_v38 = vshll.u32 %v591_v33, 16  ;;  %v683_v44 = vshrl.u32 %v591_v33, 16 }
  0x44   : > { %v890_v9 = vrot.slane %v888_v7, 5 }
  0x45   : > { %1060 = vmatmul.msk.bf16.gmra.mxu1 %vm495_vm4, %v465_v61  ;;  %v681_v43 = vrot.slane %v679_v38, 1  ;;  %v790_v61 = vpack.c.b16 %v785_v59, %v785_v59 }
  0x47   : > { %v682_v60 = vsel %vm448_vm3, %v678_v57, %v681_v43  ;;  %v882_v6 = vshrl.u32 %v790_v61, 16 }
  0x48   : > { %1063 = vmatmul.msk.bf16.gmra.mxu3 %vm495_vm4, %v493_v63  ;;  %v875_v63 = vshrl.u32 %v1141_v49, 16 }
  0x4e   : > { %1056 = vmatmul.msk.bf16.gmra.mxu0 %vm386_vm2, %v1134_v47  ;;  %1086 = vmatmul.msk.bf16.vlgmr.msrb.gmra.mxu2 %vm386_vm2, %v587_v0  ;;  %v685_v47 = vor.u32 %v683_v44, %v681_v43  ;;  %v878_v0 = vshll.u32 %v790_v61, 16 }
  0x50   : > { %v693_v50 = vsel %vm1331_vm6, %v685_v47, %v691_v48  ;;  %v880_v2 = vrot.slane %v878_v0, 1 }
  0x52   : > { %v884_v8 = vor.u32 %v882_v6, %v880_v2 }
  0x55   : > { %1061 = vmatmul.msk.bf16.gmra.mxu1 %vm495_vm4, %v472_v10  ;;  %v892_v10 = vsel %vm1331_vm6, %v884_v8, %v890_v9 }
  0x58   : > { %1092 = vmatmul.msk.bf16.vlgmr.msrb.gmra.mxu3 %vm495_vm4, %v661_v12 }
  0x5e   : > { %1119 = vmatmul.msk.bf16.vlgmr.msrb.gmra.mxu0 %vm386_vm2, %v1344_v11  ;;  %1087 = vmatmul.msk.bf16.gmra.mxu2 %vm386_vm2, %v1136_v1  ;;  %v877_v1 = vor.u32 %v875_v63, %v873_v55 }
  0x60   : > { %v881_v4 = vsel %vm448_vm3, %v877_v1, %v880_v2 }
  0x65   : > { %1125 = vmatmul.msk.bf16.vlgmr.msrb.gmra.mxu1 %vm495_vm4, %v860_v25 }
  0x68   : > { %1093 = vmatmul.msk.bf16.gmra.mxu3 %vm495_vm4, %v668_v27 }
  0x6e   : > { %1120 = vmatmul.msk.bf16.gmra.mxu0 %vm386_vm2, %v1139_v14  ;;  %1088 = vmatmul.msk.bf16.gmra.mxu2 %vm386_vm2, %v1137_v15  ;;  %v1392_v15 = vld [vmem:[%s1437_s3] ss:$0 sm:$0xff] }
  0x75   : > { %1126 = vmatmul.msk.bf16.gmra.mxu1 %vm495_vm4, %v867_v42 }
  0x78   : > { %1094 = vmatmul.msk.bf16.gmra.mxu3 %vm495_vm4, %v675_v46 }
  0x7e   : > { %1121 = vmatmul.msk.bf16.gmra.mxu0 %vm386_vm2, %v1140_v28  ;;  %1089 = vmatmul.msk.bf16.gmra.mxu2 %vm386_vm2, %v1138_v30 }
  0x85   : > { %1127 = vmatmul.msk.bf16.gmra.mxu1 %vm495_vm4, %v874_v58 }
  0x88   : > { %1095 = vmatmul.msk.bf16.gmra.mxu3 %vm495_vm4, %v682_v60 }
  0x8e   : > { %1122 = vmatmul.msk.bf16.gmra.mxu0 %vm386_vm2, %v1141_v49  ;;  %1090 = vmatmul.msk.bf16.gmra.mxu2 %vm386_vm2, %v591_v33 }
  0x95   : > { %1128 = vmatmul.msk.bf16.gmra.mxu1 %vm495_vm4, %v881_v4 }
  0x98   : > { %1096 = vmatmul.msk.bf16.gmra.mxu3 %vm495_vm4, %v693_v50 }
  0x9e   : > { %1123 = vmatmul.msk.bf16.gmra.mxu0 %vm386_vm2, %v790_v61 }
  0xa5   : > { %1129 = vmatmul.msk.bf16.gmra.mxu1 %vm495_vm4, %v892_v10 }
  0xab   : > { %v415_v12 = vpop.f32.mrf.mxu0 }
  0xac   : > { %v439_v41 = vadd.f32 %v1392_v15, %v415_v12 }
  0xb1   : > { %v430_v13 = vpop.f32.mrf.mxu2 }
  0xb2   : > { %v524_v11 = vpop.f32.mrf.mxu1  ;;  %v445_v16 = vadd.f32 %v1392_v15, %v430_v13 }
  0xb3   : > { %v417_v14 = vpop.f32.mrf.mxu0  ;;  %v548_v43 = vadd.f32 %v524_v11, %v439_v41 }
  0xb4   : > { %v440_v42 = vadd.f32 %v1392_v15, %v417_v14 }
  0xb9   : > { %v432_v18 = vpop.f32.mrf.mxu2 }
  0xba   : > { %v526_v17 = vpop.f32.mrf.mxu1  ;;  %v446_v62 = vadd.f32 %v1392_v15, %v432_v18 }
  0xbb   : > { %v539_v19 = vpop.f32.mrf.mxu3  ;;  %v420_v20 = vpop.f32.mrf.mxu0  ;;  %v549_v44 = vadd.f32 %v526_v17, %v440_v42 }
  0xbc   : > { %v1395_v21 = vadd.f32 %v539_v19, %v445_v16  ;;  %v441_v61 = vadd.f32 %v1392_v15, %v420_v20 }
  0xc1   : > { %v435_v23 = vpop.f32.mrf.mxu2 }
  0xc2   : > { %v529_v22 = vpop.f32.mrf.mxu1  ;;  %v447_v27 = vadd.f32 %v1392_v15, %v435_v23 }
  0xc3   : > { %v541_v24 = vpop.f32.mrf.mxu3  ;;  %v422_v25 = vpop.f32.mrf.mxu0  ;;  %v550_v1 = vadd.f32 %v529_v22, %v441_v61 }
  0xc4   : > { %v1398_v26 = vadd.f32 %v541_v24, %v446_v62  ;;  %v442_v0 = vadd.f32 %v1392_v15, %v422_v25 }
  0xc9   : > { %v437_v29 = vpop.f32.mrf.mxu2 }
  0xca   : > { %v531_v28 = vpop.f32.mrf.mxu1 }
  0xcb   : > { %v544_v30 = vpop.f32.mrf.mxu3  ;;  %v425_v31 = vpop.f32.mrf.mxu0  ;;  %v551_v2 = vadd.f32 %v531_v28, %v442_v0 }
  0xcc   : > { %v1401_v32 = vadd.f32 %v544_v30, %v447_v27  ;;  %v443_v20 = vadd.f32 %v1392_v15, %v425_v31 }
  0xd1   : > { %v619_v34 = vpop.f32.mrf.mxu2 }
  0xd2   : > { %v534_v33 = vpop.f32.mrf.mxu1  ;;  %v643_v47 = vadd.f32 %v619_v34, %v548_v43 }
  0xd3   : > { %v546_v35 = vpop.f32.mrf.mxu3  ;;  %v427_v36 = vpop.f32.mrf.mxu0  ;;  %v552_v23 = vadd.f32 %v534_v33, %v443_v20 }
  0xd4   : > { %v444_v22 = vadd.f32 %v1392_v15, %v427_v36 }
  0xd9   : > { %v621_v38 = vpop.f32.mrf.mxu2 }
  0xda   : > { %v536_v37 = vpop.f32.mrf.mxu1  ;;  %v644_v48 = vadd.f32 %v621_v38, %v549_v44 }
  0xdb   : > { %v723_v39 = vpop.f32.mrf.mxu3  ;;  %v818_v40 = vpop.f32.mrf.mxu0  ;;  %v553_v24 = vadd.f32 %v536_v37, %v444_v22 }
  0xdc   : > { %v747_v51 = vadd.f32 %v723_v39, %v643_v47 }
  0xde   : > { %v842_v53 = vadd.f32 %v818_v40, %v747_v51 }
  0xe1   : > { %v624_v46 = vpop.f32.mrf.mxu2 }
  0xe2   : > { %v922_v45 = vpop.f32.mrf.mxu1  ;;  %v645_v5 = vadd.f32 %v624_v46, %v550_v1 }
  0xe3   : > { %v725_v49 = vpop.f32.mrf.mxu3  ;;  %v820_v50 = vpop.f32.mrf.mxu0  ;;  %v946_v57 = vadd.f32 %v922_v45, %v842_v53 }
  0xe4   : > { %v748_v52 = vadd.f32 %v725_v49, %v644_v48 }
  0xe6   : > { %v843_v54 = vadd.f32 %v820_v50, %v748_v52 }
  0xe9   : > { %v626_v56 = vpop.f32.mrf.mxu2 }
  0xea   : > { %v924_v55 = vpop.f32.mrf.mxu1  ;;  %v646_v6 = vadd.f32 %v626_v56, %v551_v2 }
  0xeb   : > { %v728_v58 = vpop.f32.mrf.mxu3  ;;  %v947_v59 = vadd.f32 %v924_v55, %v843_v54  ;;  %v823_v60 = vpop.f32.mrf.mxu0 }
  0xec   : > { %v749_v9 = vadd.f32 %v728_v58, %v645_v5 }
  0xed   : > { %v1153_v63 = vpack.c.bf16 %v947_v59, %v946_v57 }
  0xee   : > { %v844_v12 = vadd.f32 %v823_v60, %v749_v9 }
  0xef   : > { %1154 = vst [vmem:[%s1410_s28] sm:$0xff] %v1153_v63  }
  0xf1   : > { %v629_v4 = vpop.f32.mrf.mxu2 }
  0xf2   : > { %v927_v3 = vpop.f32.mrf.mxu1  ;;  %v647_v28 = vadd.f32 %v629_v4, %v552_v23 }
  0xf3   : > { %v730_v7 = vpop.f32.mrf.mxu3  ;;  %v825_v8 = vpop.f32.mrf.mxu0  ;;  %v948_v16 = vadd.f32 %v927_v3, %v844_v12 }
  0xf4   : > { %v750_v10 = vadd.f32 %v730_v7, %v646_v6 }
  0xf6   : > { %v845_v11 = vadd.f32 %v825_v8, %v750_v10 }
  0xf9   : > { %v631_v14 = vpop.f32.mrf.mxu2 }
  0xfa   : > { %v929_v13 = vpop.f32.mrf.mxu1  ;;  %v648_v29 = vadd.f32 %v631_v14, %v553_v24 }
  0xfb   : > { %v733_v17 = vpop.f32.mrf.mxu3  ;;  %v949_v18 = vadd.f32 %v929_v13, %v845_v11  ;;  %v828_v19 = vpop.f32.mrf.mxu0 }
  0xfc   : > { %v751_v35 = vadd.f32 %v733_v17, %v647_v28 }
  0xfd   : > { %v1158_v62 = vpack.c.bf16 %v949_v18, %v948_v16 }
  0xfe   : > { %v846_v39 = vadd.f32 %v828_v19, %v751_v35 }
  0xff   : > { %1171 = vst [vmem:[%s1410_s28 + $0x8] sm:$0xff] %v1158_v62  }
 0x101   : > { %v634_v27 = vpop.f32.mrf.mxu2 }
 0x102   : > { %v932_v25 = vpop.f32.mrf.mxu1  ;;  %v649_v45 = vadd.f32 %v634_v27, %v1395_v21 }
 0x103   : > { %v735_v30 = vpop.f32.mrf.mxu3  ;;  %v830_v34 = vpop.f32.mrf.mxu0  ;;  %v950_v31 = vadd.f32 %v932_v25, %v846_v39 }
 0x104   : > { %v752_v38 = vadd.f32 %v735_v30, %v648_v29 }
 0x106   : > { %v847_v40 = vadd.f32 %v830_v34, %v752_v38 }
 0x109   : > { %v636_v42 = vpop.f32.mrf.mxu2 }
 0x10a   : > { %v934_v41 = vpop.f32.mrf.mxu1  ;;  %v650_v46 = vadd.f32 %v636_v42, %v1398_v26 }
 0x10b   : > { %v738_v43 = vpop.f32.mrf.mxu3  ;;  %v951_v44 = vadd.f32 %v934_v41, %v847_v40  ;;  %v833_v15 = vpop.f32.mrf.mxu0 }
 0x10c   : > { %v753_v49 = vadd.f32 %v738_v43, %v649_v45 }
 0x10d   : > { %v1163_v36 = vpack.c.bf16 %v951_v44, %v950_v31 }
 0x10e   : > { %v848_v51 = vadd.f32 %v833_v15, %v753_v49 }
 0x10f   : > { %1172 = vst [vmem:[%s1410_s28 + $0x10] sm:$0xff] %v1163_v36  }
 0x111   : > { %v639_v37 = vpop.f32.mrf.mxu2 }
 0x112   : > { %v937_v33 = vpop.f32.mrf.mxu1  ;;  %v651_v56 = vadd.f32 %v639_v37, %v1401_v32 }
 0x113   : > { %v740_v47 = vpop.f32.mrf.mxu3  ;;  %v835_v48 = vpop.f32.mrf.mxu0  ;;  %v952_v55 = vadd.f32 %v937_v33, %v848_v51 }
 0x114   : > { %v754_v50 = vadd.f32 %v740_v47, %v650_v46 }
 0x116   : > { %v849_v52 = vadd.f32 %v835_v48, %v754_v50 }
 0x119   : > { %v641_v54 = vpop.f32.mrf.mxu2 }
 0x11a   : > { %v939_v53 = vpop.f32.mrf.mxu1 }
 0x11b   : > { %v743_v57 = vpop.f32.mrf.mxu3  ;;  %v953_v58 = vadd.f32 %v939_v53, %v849_v52  ;;  %v838_v59 = vpop.f32.mrf.mxu0 }
 0x11c   : > { %v755_v60 = vadd.f32 %v743_v57, %v651_v56 }
 0x11d   : > { %v1168_v21 = vpack.c.bf16 %v953_v58, %v952_v55 }
 0x11e   : > { %v850_v26 = vadd.f32 %v838_v59, %v755_v60 }
 0x11f   : > { %1173 = vst [vmem:[%s1410_s28 + $0x18] sm:$0xff] %v1168_v21  }
 0x122   : > { %v942_v61 = vpop.f32.mrf.mxu1 }
 0x123   : > { %v745_v63 = vpop.f32.mrf.mxu3  ;;  %v954_v0 = vadd.f32 %v942_v61, %v850_v26  ;;  %v840_v1 = vpop.f32.mrf.mxu0 }
 0x125   : > { %v963_v2 = vpack.c.bf16 %v954_v0, %v954_v0 }
 0x127   : > { %972 = vst [vmem:[%s1410_s28 + $0x20] sm:$0xf] %v963_v2 }
 0x12a   : > { %v944_v3 = vpop.f32.mrf.mxu1 }
 0x12b PF: > { %p11_p9 = scmp.ge.s32.totalorder %s1269_s19, 4   ;;  %s1441_s15 = smov %s1221_s16 }
 0x12c   : > { %s1442_s16 = smov %s1278_s22  ;;  %s1443_s17 = smov %s1269_s19 }
 0x12d   :  { %13 = sbr.rel (!%p11_p9) target bundleno = 2 (0x2), region = 118 }

</bundles_post_ra>
